<compile_context>
chip_gen: v7x
topology: tpu7x:2x2x1
jax: 0.10.0
libtpu: 0.0.40
codegen_flags: <defaults>
</compile_context>

<pallas_src>
import jax
import jax.numpy as jnp
from jax.experimental import pallas as pl
from jax.experimental.pallas import tpu as pltpu

IN_DIM = 28 * 28          # 784 (module spec)
IN_PAD = 896              # 7 * 128, lane-aligned contraction dim
HID = 256
OUT = 10
OUT_PAD = 128             # lane-dense output slab
TB_MAX = 1024             # batch tile (fits VMEM on all of v5e/v6e/v7x)


def mlp_kernel(x_ref, w1_ref, b1_ref, w2_ref, b2_ref, o_ref):
    # layer1: (TB, 896) @ (896, 256) on the MXU, f32 accumulation.
    h = jnp.dot(x_ref[...], w1_ref[...], preferred_element_type=jnp.float32)
    # bias + ReLU in f32 on the VPU.
    h = jnp.maximum(h + b1_ref[...], 0.0)
    # layer2: (TB, 256) @ (256, 128) — bf16 MXU, f32 accumulation.
    out = jnp.dot(h.astype(jnp.bfloat16), w2_ref[...],
                  preferred_element_type=jnp.float32)
    o_ref[...] = (out + b2_ref[...]).astype(o_ref.dtype)


def network_forward(x, w1, b1, w2, b2):
    """x: (B, 1, 28, 28) float32 (NCHW).  Returns (B, 10) float32 logits.

    w1: (784, 256), b1: (1, 256), w2: (256, 10), b2: (1, 10)  — i.e. torch
    Linear weights stored transposed as (in, out), so the kernel computes
    x @ W exactly like torch's x @ W.T.
    """
    xb = x.reshape(-1, IN_DIM)                 # same semantics as .view(-1, 784)
    B = xb.shape[0]

    # --- layout plumbing in the wrapper (zero-padding, bf16 casts) ---------
    tb = min(TB_MAX, ((B + 7) // 8) * 8)       # batch tile, multiple of 8
    bp = pl.cdiv(B, tb) * tb                   # padded batch

    xb = xb.astype(jnp.bfloat16)
    xb = jnp.pad(xb, ((0, bp - B), (0, IN_PAD - IN_DIM)))          # (Bp, 896)

    w1p = jnp.pad(w1.astype(jnp.bfloat16), ((0, IN_PAD - IN_DIM), (0, 0)))
    w2p = jnp.pad(w2.astype(jnp.bfloat16), ((0, 0), (0, OUT_PAD - OUT)))
    b1p = b1.astype(jnp.float32)                                    # (1, 256)
    b2p = jnp.pad(b2.astype(jnp.float32), ((0, 0), (0, OUT_PAD - OUT)))

    grid = (bp // tb,)
    flops = 2 * bp * (IN_PAD * HID + HID * OUT_PAD)
    bytes_accessed = (bp * IN_PAD * 2 + IN_PAD * HID * 2 + HID * 2 * 4
                      + HID * OUT_PAD * 2 + OUT_PAD * 4 + bp * OUT_PAD * 4)

    out_pad = pl.pallas_call(
        mlp_kernel,
        out_shape=jax.ShapeDtypeStruct((bp, OUT_PAD), jnp.float32),
        grid=grid,
        in_specs=[
            pl.BlockSpec((tb, IN_PAD), lambda i: (i, 0)),    # x: streamed
            pl.BlockSpec((IN_PAD, HID), lambda i: (0, 0)),   # W1: resident
            pl.BlockSpec((1, HID), lambda i: (0, 0)),        # b1: resident
            pl.BlockSpec((HID, OUT_PAD), lambda i: (0, 0)),  # W2: resident
            pl.BlockSpec((1, OUT_PAD), lambda i: (0, 0)),    # b2: resident
        ],
        out_specs=pl.BlockSpec((tb, OUT_PAD), lambda i: (i, 0)),
        compiler_params=pltpu.CompilerParams(
            dimension_semantics=("parallel",)),
        cost_estimate=pl.CostEstimate(
            flops=flops, bytes_accessed=bytes_accessed, transcendentals=0),
    )(xb, w1p, b1p, w2p, b2p)

    return out_pad[:B, :OUT]


def init_params(key):
    """Deterministic init matching nn.Linear's U(-1/sqrt(fan_in), 1/sqrt(fan_in))."""
    k1, k2, k3, k4 = jax.random.split(key, 4)
    bound1 = 1.0 / jnp.sqrt(IN_DIM)
    bound2 = 1.0 / jnp.sqrt(HID)
    w1 = jax.random.uniform(k1, (IN_DIM, HID), jnp.float32, -bound1, bound1)
    b1 = jax.random.uniform(k2, (1, HID), jnp.float32, -bound1, bound1)
    w2 = jax.random.uniform(k3, (HID, OUT), jnp.float32, -bound2, bound2)
    b2 = jax.random.uniform(k4, (1, OUT), jnp.float32, -bound2, bound2)
    return w1, b1, w2, b2


if __name__ == "__main__":
    key = jax.random.PRNGKey(0)
    kx, kp = jax.random.split(key)

    # Small batch, MNIST-shaped input (784/256/10 dims are fixed by the module).
    x = jax.random.normal(kx, (2, 1, 28, 28), jnp.float32)
    w1, b1, w2, b2 = init_params(kp)

    out = network_forward(x, w1, b1, w2, b2)
    out = jax.block_until_ready(out)
    assert out.shape == (2, OUT)

    # Reference with the same bf16-input / f32-accumulate arithmetic.
    xb = x.reshape(-1, IN_DIM).astype(jnp.bfloat16)
    h_ref = jnp.maximum(
        jnp.dot(xb, w1.astype(jnp.bfloat16),
                preferred_element_type=jnp.float32) + b1, 0.0)
    ref = jnp.dot(h_ref.astype(jnp.bfloat16), w2.astype(jnp.bfloat16),
                  preferred_element_type=jnp.float32) + b2
    assert jnp.allclose(out, ref, atol=1e-2, rtol=1e-2)

    # Sanity check vs the full-f32 reference (bf16 rounding tolerance).
    xf = x.reshape(-1, IN_DIM)
    ref32 = jnp.maximum(xf @ w1 + b1, 0.0) @ w2 + b2
    assert jnp.allclose(out, ref32, atol=5e-2, rtol=5e-2)

    print("KERNEL_OK")
</pallas_src>

<mosaic_0001>
module attributes {stable_mosaic.version = 11 : i64} {
  func.func @mlp_kernel(%arg0: i32, %arg1: memref<8x896xbf16, #tpu.memory_space<vmem>>, %arg2: memref<896x256xbf16, #tpu.memory_space<vmem>>, %arg3: memref<1x256xf32, #tpu.memory_space<vmem>>, %arg4: memref<256x128xbf16, #tpu.memory_space<vmem>>, %arg5: memref<1x128xf32, #tpu.memory_space<vmem>>, %arg6: memref<8x128xf32, #tpu.memory_space<vmem>>) attributes {dimension_semantics = [#tpu.dimension_semantics<parallel>], iteration_bounds = array<i64: 1>, scalar_prefetch = 0 : i64, scratch_operands = 0 : i64, tpu.core_type = #tpu.core_type<tc>, window_params = [{transform_indices = @transform_0, window_bounds = array<i64: 8, 896>}, {pipeline_mode = #tpu.pipeline_mode<synchronous>, transform_indices = @transform_1, window_bounds = array<i64: 896, 256>}, {pipeline_mode = #tpu.pipeline_mode<synchronous>, transform_indices = @transform_2, window_bounds = array<i64: 1, 256>}, {pipeline_mode = #tpu.pipeline_mode<synchronous>, transform_indices = @transform_3, window_bounds = array<i64: 256, 128>}, {pipeline_mode = #tpu.pipeline_mode<synchronous>, transform_indices = @transform_4, window_bounds = array<i64: 1, 128>}, {transform_indices = @transform_5, window_bounds = array<i64: 8, 128>}]} {
    %c0 = arith.constant 0 : index
    %c0_0 = arith.constant 0 : index
    %0 = vector.load %arg1[%c0, %c0_0] : memref<8x896xbf16, #tpu.memory_space<vmem>>, vector<8x896xbf16>
    %c0_1 = arith.constant 0 : index
    %c0_2 = arith.constant 0 : index
    %1 = vector.load %arg2[%c0_1, %c0_2] : memref<896x256xbf16, #tpu.memory_space<vmem>>, vector<896x256xbf16>
    %cst = arith.constant dense<0.000000e+00> : vector<8x256xf32>
    %2 = tpu.matmul %0, %1, %cst {dimension_numbers = #tpu.dot_dimension_numbers<[1], [0], [0], [1], [0, 0, 1, 1], [], []>} : vector<8x896xbf16>, vector<896x256xbf16>, vector<8x256xf32> -> vector<8x256xf32>
    %c0_3 = arith.constant 0 : index
    %c0_4 = arith.constant 0 : index
    %3 = vector.load %arg3[%c0_3, %c0_4] : memref<1x256xf32, #tpu.memory_space<vmem>>, vector<1x256xf32>
    %4 = vector.broadcast %3 : vector<1x256xf32> to vector<8x256xf32>
    %5 = arith.addf %2, %4 : vector<8x256xf32>
    %cst_5 = arith.constant 0.000000e+00 : f32
    %6 = vector.broadcast %cst_5 : f32 to vector<8x256xf32>
    %7 = arith.maximumf %5, %6 : vector<8x256xf32>
    %8 = arith.truncf %7 : vector<8x256xf32> to vector<8x256xbf16>
    %c0_6 = arith.constant 0 : index
    %c0_7 = arith.constant 0 : index
    %9 = vector.load %arg4[%c0_6, %c0_7] : memref<256x128xbf16, #tpu.memory_space<vmem>>, vector<256x128xbf16>
    %cst_8 = arith.constant dense<0.000000e+00> : vector<8x128xf32>
    %10 = tpu.matmul %8, %9, %cst_8 {dimension_numbers = #tpu.dot_dimension_numbers<[1], [0], [0], [1], [0, 0, 1, 1], [], []>} : vector<8x256xbf16>, vector<256x128xbf16>, vector<8x128xf32> -> vector<8x128xf32>
    %c0_9 = arith.constant 0 : index
    %c0_10 = arith.constant 0 : index
    %11 = vector.load %arg5[%c0_9, %c0_10] : memref<1x128xf32, #tpu.memory_space<vmem>>, vector<1x128xf32>
    %12 = vector.broadcast %11 : vector<1x128xf32> to vector<8x128xf32>
    %13 = arith.addf %10, %12 : vector<8x128xf32>
    %c0_11 = arith.constant 0 : index
    %c0_12 = arith.constant 0 : index
    %14 = vector.load %arg6[%c0_11, %c0_12] : memref<8x128xf32, #tpu.memory_space<vmem>>, vector<8x128xf32>
    tpu.vector_store %arg6[%c0_11, %c0_12], %13 {strides = array<i32>} : memref<8x128xf32, #tpu.memory_space<vmem>>, vector<8x128xf32>,
    return
  }
  func.func @transform_0(%arg0: i32) -> (i32, i32) {
    %c0_i32 = arith.constant 0 : i32
    %c0_i32_0 = arith.constant 0 : i32
    return %arg0, %c0_i32 : i32, i32
  }
  func.func @transform_1(%arg0: i32) -> (i32, i32) {
    %c0_i32 = arith.constant 0 : i32
    %c0_i32_0 = arith.constant 0 : i32
    %c0_i32_1 = arith.constant 0 : i32
    return %c0_i32, %c0_i32_0 : i32, i32
  }
  func.func @transform_2(%arg0: i32) -> (i32, i32) {
    %c0_i32 = arith.constant 0 : i32
    %c0_i32_0 = arith.constant 0 : i32
    %c0_i32_1 = arith.constant 0 : i32
    return %c0_i32, %c0_i32_0 : i32, i32
  }
  func.func @transform_3(%arg0: i32) -> (i32, i32) {
    %c0_i32 = arith.constant 0 : i32
    %c0_i32_0 = arith.constant 0 : i32
    %c0_i32_1 = arith.constant 0 : i32
    return %c0_i32, %c0_i32_0 : i32, i32
  }
  func.func @transform_4(%arg0: i32) -> (i32, i32) {
    %c0_i32 = arith.constant 0 : i32
    %c0_i32_0 = arith.constant 0 : i32
    %c0_i32_1 = arith.constant 0 : i32
    return %c0_i32, %c0_i32_0 : i32, i32
  }
  func.func @transform_5(%arg0: i32) -> (i32, i32) {
    %c0_i32 = arith.constant 0 : i32
    %c0_i32_0 = arith.constant 0 : i32
    return %arg0, %c0_i32 : i32, i32
  }
}

</mosaic_0001>

<bundles_post_ra>
// kernel: tpu_custom_call.1
= control target key start
LH: loop header
LB: loop body
LE: loop exit
PB: predicated region body
PF: predicated region fallthrough
CT: control target
= control target key end

     0   :  { %10 = vsyncpa [#allocation3], 0  ;;  %s1701_s0 = inlined_call_operand.hbm [shape: bf16[8,896], index: 0, kind: input, shape index: {}]   ;;  %s1702_s1 = inlined_call_operand.hbm [shape: bf16[896,256], index: 1, kind: input, shape index: {}]   ;;  %s1703_s2 = inlined_call_operand.vmem [shape: f32[1,256], index: 2, kind: input, shape index: {}]   ;;  %s1704_s3 = inlined_call_operand.hbm [shape: bf16[256,128], index: 3, kind: input, shape index: {}]   ;;  %s1705_s4 = inlined_call_operand.vmem [shape: f32[1,128], index: 4, kind: input, shape index: {}]   ;;  %s1706_s5 = inlined_call_operand.hbm [shape: f32[8,128], index: 5, kind: output, shape index: {}]  }
   0x1   :  { %11 = vsyncpa [#allocation6], 0 }
   0x2   :  { %12 = vsyncpa [#allocation4], 0  ;;  %s1596_s18 = smov [#allocation5]   ;;  %s1502_s22 = scalar_lea.hbm %s1702_s1, 14336 }
   0x3   :  { %s28_s19 = sshll.u32 %s1596_s18, 4  ;;  %p1503_p0 = scmp.ne.s32.totalorder %s1702_s1, %s1502_s22  ;;  %s29_s19 = int_to_ptr.vmem [resolvable:$true] %s28_s19 }
   0x4   :  { %p1506_p1 = scmp.lt.u32.totalorder %s1502_s22, %s1702_s1 }
   0x6   :  { %p1508_p2 = pnand %p1506_p1, %p1503_p0 }
   0x8   :  { %1511 = shalt.err (!%p1508_p2)
}
   0x9   :  { %s1512_s27 = scalar_lea.vmem %s29_s19, 14336  ;;  %p1517_p4 = scmp.lt.s32.totalorder %s29_s19, %s29_s19 }
   0xa   :  { %p1513_p3 = scmp.ne.s32.totalorder %s29_s19, %s1512_s27  ;;  %p1518_p5 = scmp.lt.s32.totalorder %s1512_s27, %s1512_s27 }
   0xc   :  { %p1519_p6 = por %p1518_p5, %p1517_p4 }
   0xe   :  { %p1520_p7 = pnand %p1519_p6, %p1513_p3 }
  0x10   :  { %1523 = shalt.err (!%p1520_p7)
}
  0x11   :  { %s1597_s28 = smov 128   ;;  %s1598_s29 = smov 8  }
  0x12   :  { %34 = dma.hbm_to_vmem [thread:$0]  %s1702_s1, 14336, %s29_s19, [#allocation6], %s1597_s28, %s1597_s28, %s1598_s29  }
  0x13   :  { %s1599_s7 = smov [#allocation2]   ;;  %s1600_s9 = smov [#allocation7]  }
  0x14   :  { %s19_s8 = sshll.u32 %s1599_s7, 4  ;;  %s42_s10 = sshll.u32 %s1600_s9, 4  ;;  %s20_s8 = int_to_ptr.vmem [resolvable:$true] %s19_s8  ;;  %s43_s10 = int_to_ptr.vmem [resolvable:$true] %s42_s10 }
  0x15   :  { %s1524_s13 = scalar_lea.hbm %s1701_s0, 448 }
  0x16   :  { %p1525_p8 = scmp.ne.s32.totalorder %s1701_s0, %s1524_s13  ;;  %p1528_p9 = scmp.lt.u32.totalorder %s1524_s13, %s1701_s0 }
  0x18   :  { %p1530_p10 = pnand %p1528_p9, %p1525_p8 }
  0x1a   :  { %1533 = shalt.err (!%p1530_p10)
}
  0x1b   :  { %s1534_s1 = scalar_lea.vmem %s20_s8, 448  ;;  %p1539_p12 = scmp.lt.s32.totalorder %s20_s8, %s20_s8 }
  0x1c   :  { %p1535_p11 = scmp.ne.s32.totalorder %s20_s8, %s1534_s1  ;;  %p1540_p13 = scmp.lt.s32.totalorder %s1534_s1, %s1534_s1 }
  0x1e   :  { %p1541_p0 = por %p1540_p13, %p1539_p12 }
  0x20   :  { %p1542_p1 = pnand %p1541_p0, %p1535_p11 }
  0x22   :  { %1545 = shalt.err (!%p1542_p1)
}
  0x23   :  { %22 = dma.hbm_to_vmem [thread:$0]  %s1701_s0, 448, %s20_s8, [#allocation3]  }
  0x24   :  { %s1546_s22 = scalar_lea.hbm %s1704_s3, 2048 }
  0x25   :  { %p1547_p2 = scmp.ne.s32.totalorder %s1704_s3, %s1546_s22  ;;  %p1550_p3 = scmp.lt.u32.totalorder %s1546_s22, %s1704_s3 }
  0x27   :  { %p1552_p4 = pnand %p1550_p3, %p1547_p2 }
  0x29   :  { %1555 = shalt.err (!%p1552_p4)
}
  0x2a   :  { %s1556_s27 = scalar_lea.vmem %s43_s10, 2048  ;;  %p1561_p6 = scmp.lt.s32.totalorder %s43_s10, %s43_s10 }
  0x2b   :  { %p1557_p5 = scmp.ne.s32.totalorder %s43_s10, %s1556_s27  ;;  %p1562_p7 = scmp.lt.s32.totalorder %s1556_s27, %s1556_s27 }
  0x2d   :  { %p1563_p8 = por %p1562_p7, %p1561_p6 }
  0x2f   :  { %p1564_p9 = pnand %p1563_p8, %p1557_p5 }
  0x31   :  { %1567 = shalt.err (!%p1564_p9)
}
  0x32   :  { %s1601_s0 = smov 64   ;;  %s1602_s28 = smov 4  }
  0x33   :  { %48 = dma.hbm_to_vmem [thread:$0]  %s1704_s3, 2048, %s43_s10, [#allocation6], %s1601_s0, %s1601_s0, %s1602_s28  }
  0x34   :  { %1590 = dma.done.wait [#allocation3], 448  }
  0x35   :  { %1591 = vsyncadd [#allocation3], 4294966848 }
  0x36   :  { %1592 = dma.done.wait [#allocation6], 16384  }
  0x37   :  { %1593 = vsyncadd [#allocation6], 4294950912  ;;  %v1311_v0 = vld [vmem:[#allocation5 + $0x104] ss:$8 sps:$4 sm:$0xff]   ;;  %v1313_v1 = vld [vmem:[#allocation5 + $0x100] ss:$8 sps:$4 sm:$0xff]  }
  0x38   :  { %815 = vmatprep.subr.bf16.mxu0 %v1311_v0  ;;  %v1314_v2 = vld [vmem:[#allocation5 + $0x114] ss:$8 sps:$4 sm:$0xff]   ;;  %v1316_v3 = vld [vmem:[#allocation5 + $0x110] ss:$8 sps:$4 sm:$0xff]   ;;  %v1317_v4 = vld [vmem:[#allocation5 + $0x124] ss:$8 sps:$4 sm:$0xff]  }
  0x39   :  { %816 = vmatpush1.bf16.msra.mxu0 %v1313_v1  ;;  %v1319_v5 = vld [vmem:[#allocation5 + $0x120] ss:$8 sps:$4 sm:$0xff]   ;;  %v1320_v6 = vld [vmem:[#allocation5 + $0x134] ss:$8 sps:$4 sm:$0xff]   ;;  %v1322_v7 = vld [vmem:[#allocation5 + $0x130] ss:$8 sps:$4 sm:$0xff]  }
  0x3a   :  { %817 = vmatprep.subr.bf16.mxu0 %v1314_v2  ;;  %v1335_v8 = vld [vmem:[#allocation5 + $0x4] ss:$8 sps:$4 sm:$0xff]   ;;  %v1337_v9 = vld [vmem:[#allocation5] ss:$8 sps:$4 sm:$0xff]   ;;  %v1341_v11 = vld [vmem:[#allocation5 + $0x14] ss:$8 sps:$4 sm:$0xff]  }
  0x3b   :  { %v1323_v10 = vld [vmem:[#allocation5 + $0x144] ss:$8 sps:$4 sm:$0xff]   ;;  %774 = vmatprep.subr.bf16.mxu1 %v1335_v8  ;;  %v1343_v12 = vld [vmem:[#allocation5 + $0x10] ss:$8 sps:$4 sm:$0xff]   ;;  %v1325_v13 = vld [vmem:[#allocation5 + $0x140] ss:$8 sps:$4 sm:$0xff]  }
  0x3c   :  { %775 = vmatpush1.bf16.msra.mxu1 %v1337_v9  ;;  %v1326_v14 = vld [vmem:[#allocation5 + $0x154] ss:$8 sps:$4 sm:$0xff]   ;;  %v1347_v15 = vld [vmem:[#allocation5 + $0x24] ss:$8 sps:$4 sm:$0xff]   ;;  %v1349_v16 = vld [vmem:[#allocation5 + $0x20] ss:$8 sps:$4 sm:$0xff]  }
  0x3d   :  { %818 = vmatpush1.bf16.msra.mxu0 %v1316_v3  ;;  %776 = vmatprep.subr.bf16.mxu1 %v1341_v11  ;;  %v1328_v17 = vld [vmem:[#allocation5 + $0x150] ss:$8 sps:$4 sm:$0xff]   ;;  %v1353_v18 = vld [vmem:[#allocation5 + $0x34] ss:$8 sps:$4 sm:$0xff]   ;;  %v1329_v19 = vld [vmem:[#allocation5 + $0x164] ss:$8 sps:$4 sm:$0xff]  }
  0x3e   :  { %819 = vmatprep.subr.bf16.mxu0 %v1317_v4  ;;  %v1355_v20 = vld [vmem:[#allocation5 + $0x30] ss:$8 sps:$4 sm:$0xff]   ;;  %v1331_v21 = vld [vmem:[#allocation5 + $0x160] ss:$8 sps:$4 sm:$0xff]   ;;  %v1359_v22 = vld [vmem:[#allocation5 + $0x44] ss:$8 sps:$4 sm:$0xff]  }
  0x3f   :  { %v1332_v23 = vld [vmem:[#allocation5 + $0x174] ss:$8 sps:$4 sm:$0xff]   ;;  %v1361_v24 = vld [vmem:[#allocation5 + $0x40] ss:$8 sps:$4 sm:$0xff]   ;;  %v1334_v25 = vld [vmem:[#allocation5 + $0x170] ss:$8 sps:$4 sm:$0xff]  }
  0x40   :  { %777 = vmatpush1.bf16.msra.mxu1 %v1343_v12  ;;  %v1365_v26 = vld [vmem:[#allocation5 + $0x54] ss:$8 sps:$4 sm:$0xff]   ;;  %v1338_v27 = vld [vmem:[#allocation5 + $0x184] ss:$8 sps:$4 sm:$0xff]   ;;  %v1367_v28 = vld [vmem:[#allocation5 + $0x50] ss:$8 sps:$4 sm:$0xff]  }
  0x41   :  { %820 = vmatpush1.bf16.msra.mxu0 %v1319_v5  ;;  %778 = vmatprep.subr.bf16.mxu1 %v1347_v15  ;;  %v1340_v29 = vld [vmem:[#allocation5 + $0x180] ss:$8 sps:$4 sm:$0xff]   ;;  %v1371_v30 = vld [vmem:[#allocation5 + $0x64] ss:$8 sps:$4 sm:$0xff]   ;;  %v1344_v31 = vld [vmem:[#allocation5 + $0x194] ss:$8 sps:$4 sm:$0xff]  }
  0x42   :  { %821 = vmatprep.subr.bf16.mxu0 %v1320_v6  ;;  %v1671_v32 = vld [vmem:[#allocation2 + $0x8] sm:$0xff]  ;;  %v1373_v34 = vld [vmem:[#allocation5 + $0x60] ss:$8 sps:$4 sm:$0xff]   ;;  %v1377_v36 = vld [vmem:[#allocation5 + $0x74] ss:$8 sps:$4 sm:$0xff]   ;;  %s1604_s8 = smov [#allocation8]  }
  0x43   :  { %v1346_v33 = vld [vmem:[#allocation5 + $0x190] ss:$8 sps:$4 sm:$0xff]   ;;  %v1137_v35 = vcombine.high %v1671_v32, %v1671_v32  ;;  %v1350_v37 = vld [vmem:[#allocation5 + $0x1a4] ss:$8 sps:$4 sm:$0xff]   ;;  %v1352_v38 = vld [vmem:[#allocation5 + $0x1a0] ss:$8 sps:$4 sm:$0xff]   ;;  %v1136_v1 = vcombine.low %v1671_v32, %v1671_v32 }
  0x44   :  { %779 = vmatpush1.bf16.msra.mxu1 %v1349_v16  ;;  %v1379_v39 = vld [vmem:[#allocation5 + $0x70] ss:$8 sps:$4 sm:$0xff]   ;;  %v1383_v40 = vld [vmem:[#allocation5 + $0x84] ss:$8 sps:$4 sm:$0xff]   ;;  %v1356_v41 = vld [vmem:[#allocation5 + $0x1b4] ss:$8 sps:$4 sm:$0xff]  }
  0x45   :  { %822 = vmatpush1.bf16.msra.mxu0 %v1322_v7  ;;  %780 = vmatprep.subr.bf16.mxu1 %v1353_v18  ;;  %v1358_v42 = vld [vmem:[#allocation5 + $0x1b0] ss:$8 sps:$4 sm:$0xff]   ;;  %v1385_v43 = vld [vmem:[#allocation5 + $0x80] ss:$8 sps:$4 sm:$0xff]   ;;  %v1391_v44 = vld [vmem:[#allocation5 + $0x94] ss:$8 sps:$4 sm:$0xff]  }
  0x46   :  { %823 = vmatprep.subr.bf16.mxu0 %v1323_v10  ;;  %847 = vmatprep.mubr.bf16.mxu0 %v1137_v35  ;;  %v1362_v45 = vld [vmem:[#allocation5 + $0x1c4] ss:$8 sps:$4 sm:$0xff]   ;;  %v1364_v46 = vld [vmem:[#allocation5 + $0x1c0] ss:$8 sps:$4 sm:$0xff]   ;;  %v1393_v47 = vld [vmem:[#allocation5 + $0x90] ss:$8 sps:$4 sm:$0xff]  }
  0x47   :  { %v1397_v48 = vld [vmem:[#allocation5 + $0xa4] ss:$8 sps:$4 sm:$0xff]   ;;  %v1368_v49 = vld [vmem:[#allocation5 + $0x1d4] ss:$8 sps:$4 sm:$0xff]   ;;  %v1370_v50 = vld [vmem:[#allocation5 + $0x1d0] ss:$8 sps:$4 sm:$0xff]  }
  0x48   :  { %781 = vmatpush1.bf16.msra.mxu1 %v1355_v20  ;;  %v1399_v51 = vld [vmem:[#allocation5 + $0xa0] ss:$8 sps:$4 sm:$0xff]   ;;  %v1403_v52 = vld [vmem:[#allocation5 + $0xb4] ss:$8 sps:$4 sm:$0xff]   ;;  %v1374_v53 = vld [vmem:[#allocation5 + $0x1e4] ss:$8 sps:$4 sm:$0xff]  }
  0x49   :  { %824 = vmatpush1.bf16.msra.mxu0 %v1325_v13  ;;  %782 = vmatprep.subr.bf16.mxu1 %v1359_v22  ;;  %v1376_v54 = vld [vmem:[#allocation5 + $0x1e0] ss:$8 sps:$4 sm:$0xff]   ;;  %v1405_v56 = vld [vmem:[#allocation5 + $0xb0] ss:$8 sps:$4 sm:$0xff]   ;;  %v1409_v58 = vld [vmem:[#allocation5 + $0xc4] ss:$8 sps:$4 sm:$0xff]  }
  0x4a   :  { %825 = vmatprep.subr.bf16.mxu0 %v1326_v14  ;;  %v61_v55 = vld [vmem:[#allocation2] sm:$0xff]  ;;  %v1380_v59 = vld [vmem:[#allocation5 + $0x1f4] ss:$8 sps:$4 sm:$0xff]   ;;  %v1382_v60 = vld [vmem:[#allocation5 + $0x1f0] ss:$8 sps:$4 sm:$0xff]   ;;  %s1124_s9 = sshll.u32 %s1604_s8, 4  ;;  %s1125_s9 = int_to_ptr.vmem [resolvable:$true] %s1124_s9 }
  0x4b   :  { %v1135_v57 = vcombine.high %v61_v55, %v61_v55  ;;  %v1411_v61 = vld [vmem:[#allocation5 + $0xc0] ss:$8 sps:$4 sm:$0xff]   ;;  %v1415_v62 = vld [vmem:[#allocation5 + $0xd4] ss:$8 sps:$4 sm:$0xff]   ;;  %v1390_v63 = vld [vmem:[#allocation5 + $0x204] ss:$8 sps:$4 sm:$0xff]   ;;  %v1134_v14 = vcombine.low %v61_v55, %v61_v55  ;;  %p1573_p11 = scmp.lt.s32.totalorder %s1125_s9, %s1125_s9 }
  0x4c   :  { %783 = vmatpush1.bf16.msra.mxu1 %v1361_v24  ;;  %v1388_v0 = vld [vmem:[#allocation5 + $0x200] ss:$8 sps:$4 sm:$0xff]   ;;  %v1417_v2 = vld [vmem:[#allocation5 + $0xd0] ss:$8 sps:$4 sm:$0xff]   ;;  %v1421_v3 = vld [vmem:[#allocation5 + $0xe4] ss:$8 sps:$4 sm:$0xff]  }
  0x4d   :  { %826 = vmatpush1.bf16.msra.mxu0 %v1328_v17  ;;  %784 = vmatprep.subr.bf16.mxu1 %v1365_v26  ;;  %v1396_v4 = vld [vmem:[#allocation5 + $0x214] ss:$8 sps:$4 sm:$0xff]   ;;  %v1394_v5 = vld [vmem:[#allocation5 + $0x210] ss:$8 sps:$4 sm:$0xff]   ;;  %v1423_v6 = vld [vmem:[#allocation5 + $0xe0] ss:$8 sps:$4 sm:$0xff]  }
  0x4e   :  { %827 = vmatprep.subr.bf16.mxu0 %v1329_v19  ;;  %806 = vmatprep.mubr.bf16.mxu1 %v1135_v57  ;;  %v1427_v7 = vld [vmem:[#allocation5 + $0xf4] ss:$8 sps:$4 sm:$0xff]   ;;  %v1402_v8 = vld [vmem:[#allocation5 + $0x224] ss:$8 sps:$4 sm:$0xff]   ;;  %v1400_v9 = vld [vmem:[#allocation5 + $0x220] ss:$8 sps:$4 sm:$0xff]  }
  0x4f   :  { %v1429_v10 = vld [vmem:[#allocation5 + $0xf0] ss:$8 sps:$4 sm:$0xff]   ;;  %v1437_v11 = vld [vmem:[#allocation5 + $0x304] ss:$8 sps:$4 sm:$0xff]   ;;  %v1408_v12 = vld [vmem:[#allocation5 + $0x234] ss:$8 sps:$4 sm:$0xff]  }
  0x50   :  { %785 = vmatpush1.bf16.msra.mxu1 %v1367_v28  ;;  %v1406_v13 = vld [vmem:[#allocation5 + $0x230] ss:$8 sps:$4 sm:$0xff]   ;;  %v1435_v15 = vld [vmem:[#allocation5 + $0x300] ss:$8 sps:$4 sm:$0xff]   ;;  %v1443_v16 = vld [vmem:[#allocation5 + $0x314] ss:$8 sps:$4 sm:$0xff]  }
  0x51   :  { %828 = vmatpush1.bf16.msra.mxu0 %v1331_v21  ;;  %786 = vmatprep.subr.bf16.mxu1 %v1371_v30  ;;  %v1677_v17 = vld [vmem:[#allocation2 + $0x10] sm:$0xff]  ;;  %v1414_v18 = vld [vmem:[#allocation5 + $0x244] ss:$8 sps:$4 sm:$0xff]   ;;  %v1412_v21 = vld [vmem:[#allocation5 + $0x240] ss:$8 sps:$4 sm:$0xff]   ;;  %v1603_v24 = vmov 0  }
  0x52   :  { %829 = vmatprep.subr.bf16.mxu0 %v1332_v23  ;;  %v1441_v19 = vld [vmem:[#allocation5 + $0x310] ss:$8 sps:$4 sm:$0xff]   ;;  %v1139_v20 = vcombine.high %v1677_v17, %v1677_v17  ;;  %v1449_v22 = vld [vmem:[#allocation5 + $0x324] ss:$8 sps:$4 sm:$0xff]   ;;  %v1420_v23 = vld [vmem:[#allocation5 + $0x254] ss:$8 sps:$4 sm:$0xff]  }
  0x53   :  { %v1418_v26 = vld [vmem:[#allocation5 + $0x250] ss:$8 sps:$4 sm:$0xff]   ;;  %v1426_v28 = vld [vmem:[#allocation5 + $0x264] ss:$8 sps:$4 sm:$0xff]   ;;  %v1424_v30 = vld [vmem:[#allocation5 + $0x260] ss:$8 sps:$4 sm:$0xff]  }
  0x54   :  { %787 = vmatpush1.bf16.msra.mxu1 %v1373_v34  ;;  %v1432_v32 = vld [vmem:[#allocation5 + $0x274] ss:$8 sps:$4 sm:$0xff]   ;;  %v1430_v34 = vld [vmem:[#allocation5 + $0x270] ss:$8 sps:$4 sm:$0xff]   ;;  %v1474_v55 = vld [vmem:[#allocation5 + $0x2e0] ss:$8 sps:$4 sm:$0xff]  }
  0x55   :  { %830 = vmatpush1.bf16.msra.mxu0 %v1334_v25  ;;  %788 = vmatprep.subr.bf16.mxu1 %v1377_v36  ;;  %v1447_v25 = vld [vmem:[#allocation5 + $0x320] ss:$8 sps:$4 sm:$0xff]   ;;  %v1467_v35 = vld [vmem:[#allocation5 + $0x354] ss:$8 sps:$4 sm:$0xff]   ;;  %v1440_v36 = vld [vmem:[#allocation5 + $0x284] ss:$8 sps:$4 sm:$0xff]  }
  0x56   :  { %831 = vmatprep.subr.bf16.mxu0 %v1338_v27  ;;  %v1455_v27 = vld [vmem:[#allocation5 + $0x334] ss:$8 sps:$4 sm:$0xff]   ;;  %v1480_v57 = vld [vmem:[#allocation5 + $0x2f0] ss:$8 sps:$4 sm:$0xff]   ;;  %s1568_s10 = scalar_lea.vmem %s1125_s9, 128 }
  0x57   :  { %p1569_p10 = scmp.ne.s32.totalorder %s1125_s9, %s1568_s10  ;;  %p1574_p12 = scmp.lt.s32.totalorder %s1568_s10, %s1568_s10 }
  0x58   :  { %789 = vmatpush1.bf16.msra.mxu1 %v1379_v39  ;;  %v1473_v39 = vld [vmem:[#allocation5 + $0x364] ss:$8 sps:$4 sm:$0xff]  }
  0x59   :  { %832 = vmatpush1.bf16.msra.mxu0 %v1340_v29  ;;  %790 = vmatprep.subr.bf16.mxu1 %v1383_v40  ;;  %v1453_v29 = vld [vmem:[#allocation5 + $0x330] ss:$8 sps:$4 sm:$0xff]   ;;  %v1446_v40 = vld [vmem:[#allocation5 + $0x294] ss:$8 sps:$4 sm:$0xff]   ;;  %p1575_p13 = por %p1574_p12, %p1573_p11 }
  0x5a   :  { %833 = vmatprep.subr.bf16.mxu0 %v1344_v31  ;;  %v1461_v31 = vld [vmem:[#allocation5 + $0x344] ss:$8 sps:$4 sm:$0xff]  }
  0x5b   :  { %p1576_p0 = pnand %p1575_p13, %p1569_p10 }
  0x5c   :  { %791 = vmatpush1.bf16.msra.mxu1 %v1385_v43  ;;  %v1479_v43 = vld [vmem:[#allocation5 + $0x374] ss:$8 sps:$4 sm:$0xff]  }
  0x5d   :  { %834 = vmatpush1.bf16.msra.mxu0 %v1346_v33  ;;  %792 = vmatprep.subr.bf16.mxu1 %v1391_v44  ;;  %v1459_v33 = vld [vmem:[#allocation5 + $0x340] ss:$8 sps:$4 sm:$0xff]   ;;  %v1452_v44 = vld [vmem:[#allocation5 + $0x2a4] ss:$8 sps:$4 sm:$0xff]  }
  0x5e   :  { %835 = vmatprep.subr.bf16.mxu0 %v1350_v37  ;;  %v1465_v37 = vld [vmem:[#allocation5 + $0x350] ss:$8 sps:$4 sm:$0xff]  }
  0x60   :  { %793 = vmatpush1.bf16.msra.mxu1 %v1393_v47  ;;  %v1458_v47 = vld [vmem:[#allocation5 + $0x2b4] ss:$8 sps:$4 sm:$0xff]  }
  0x61   :  { %836 = vmatpush1.bf16.msra.mxu0 %v1352_v38  ;;  %794 = vmatprep.subr.bf16.mxu1 %v1397_v48  ;;  %v1438_v38 = vld [vmem:[#allocation5 + $0x280] ss:$8 sps:$4 sm:$0xff]   ;;  %v1485_v48 = vld [vmem:[#allocation2 + $0x18] ss:$0 sps:$4 sm:$0xff]  }
  0x62   :  { %837 = vmatprep.subr.bf16.mxu0 %v1356_v41  ;;  %v1471_v41 = vld [vmem:[#allocation5 + $0x360] ss:$8 sps:$4 sm:$0xff]  }
  0x64   :  { %795 = vmatpush1.bf16.msra.mxu1 %v1399_v51  ;;  %v1462_v51 = vld [vmem:[#allocation5 + $0x2c0] ss:$8 sps:$4 sm:$0xff]  }
  0x65   :  { %838 = vmatpush1.bf16.msra.mxu0 %v1358_v42  ;;  %796 = vmatprep.subr.bf16.mxu1 %v1403_v52  ;;  %v1444_v42 = vld [vmem:[#allocation5 + $0x290] ss:$8 sps:$4 sm:$0xff]   ;;  %v1470_v52 = vld [vmem:[#allocation5 + $0x2d4] ss:$8 sps:$4 sm:$0xff]  }
  0x66   :  { %839 = vmatprep.subr.bf16.mxu0 %v1362_v45  ;;  %v1477_v45 = vld [vmem:[#allocation5 + $0x370] ss:$8 sps:$4 sm:$0xff]  }
  0x68   :  { %797 = vmatpush1.bf16.msra.mxu1 %v1405_v56  ;;  %v1482_v56 = vld [vmem:[#allocation5 + $0x2f4] ss:$8 sps:$4 sm:$0xff]  }
  0x69   :  { %840 = vmatpush1.bf16.msra.mxu0 %v1364_v46  ;;  %798 = vmatprep.subr.bf16.mxu1 %v1409_v58  ;;  %v1450_v46 = vld [vmem:[#allocation5 + $0x2a0] ss:$8 sps:$4 sm:$0xff]   ;;  %v1138_v58 = vcombine.low %v1677_v17, %v1677_v17 }
  0x6a   :  { %841 = vmatprep.subr.bf16.mxu0 %v1368_v49  ;;  %v1456_v49 = vld [vmem:[#allocation5 + $0x2b0] ss:$8 sps:$4 sm:$0xff]  }
  0x6c   :  { %799 = vmatpush1.bf16.msra.mxu1 %v1411_v61  ;;  %v1488_v61 = vld [vmem:[#allocation7 + $0x48] sm:$0xff]  }
  0x6d   :  { %842 = vmatpush1.bf16.msra.mxu0 %v1370_v50  ;;  %800 = vmatprep.subr.bf16.mxu1 %v1415_v62  ;;  %v1464_v50 = vld [vmem:[#allocation5 + $0x2c4] ss:$8 sps:$4 sm:$0xff]  }
  0x6e   :  { %843 = vmatprep.subr.bf16.mxu0 %v1374_v53  ;;  %v1468_v53 = vld [vmem:[#allocation5 + $0x2d0] ss:$8 sps:$4 sm:$0xff]   ;;  %v1489_v62 = vld [vmem:[#allocation7 + $0x8] sm:$0xff]  }
  0x70   :  { %801 = vmatpush1.bf16.msra.mxu1 %v1417_v2  ;;  %v1493_v2 = vld [vmem:[#allocation7 + $0x18] sm:$0xff]  }
  0x71   :  { %844 = vmatpush1.bf16.msra.mxu0 %v1376_v54  ;;  %802 = vmatprep.subr.bf16.mxu1 %v1421_v3  ;;  %v1476_v54 = vld [vmem:[#allocation5 + $0x2e4] ss:$8 sps:$4 sm:$0xff]  }
  0x72   :  { %845 = vmatprep.subr.bf16.mxu0 %v1380_v59  ;;  %v1486_v59 = vld [vmem:[#allocation7 + $0x40] sm:$0xff]  }
  0x73   :  { %v1494_v3 = vld [vmem:[#allocation7 + $0x60] sm:$0xff]  }
  0x74   :  { %803 = vmatpush1.bf16.msra.mxu1 %v1423_v6  ;;  %v1497_v6 = vld [vmem:[#allocation7 + $0x28] sm:$0xff]  }
  0x75   :  { %846 = vmatpush1.bf16.msra.mxu0 %v1382_v60  ;;  %804 = vmatprep.subr.bf16.mxu1 %v1427_v7  ;;  %v1487_v60 = vld [vmem:[#allocation7] sm:$0xff]   ;;  %v1498_v7 = vld [vmem:[#allocation7 + $0x70] sm:$0xff]  }
  0x76   :  { %856 = vmatprep.subr.bf16.mxu0 %v1390_v63  ;;  %v1490_v63 = vld [vmem:[#allocation7 + $0x50] sm:$0xff]  }
  0x78   :  { %848 = vmatmul.mubr.bf16.vlgmr.msra.gmra.mrb[0].mxu0 %v1136_v1  ;;  %805 = vmatpush1.bf16.msra.mxu1 %v1429_v10  ;;  %v1492_v1 = vld [vmem:[#allocation7 + $0x58] sm:$0xff]  }
  0x79   :  { %857 = vmatpush1.bf16.msra.mxu0 %v1388_v0  ;;  %897 = vmatprep.subr.bf16.mxu1 %v1437_v11  ;;  %v1491_v0 = vld [vmem:[#allocation7 + $0x10] sm:$0xff]   ;;  %v1501_v10 = vld [vmem:[#allocation7 + $0x38] sm:$0xff]  }
  0x7a   :  { %858 = vmatprep.subr.bf16.mxu0 %v1396_v4  ;;  %888 = vmatprep.mubr.bf16.mxu0 %v1139_v20  ;;  %v1495_v4 = vld [vmem:[#allocation7 + $0x20] sm:$0xff]  }
  0x7b   :  { %807 = vmatmul.mubr.bf16.vlgmr.msra.gmra.mrb[0].mxu1 %v1134_v14 }
  0x7c   :  { %898 = vmatpush1.bf16.msra.mxu1 %v1435_v15  ;;  %929 = vmatprep.mubr.bf16.mxu1 %v1603_v24 }
  0x7d   :  { %859 = vmatpush1.bf16.msra.mxu0 %v1394_v5  ;;  %899 = vmatprep.subr.bf16.mxu1 %v1443_v16  ;;  %v1496_v5 = vld [vmem:[#allocation7 + $0x68] sm:$0xff]  }
  0x7e   :  { %860 = vmatprep.subr.bf16.mxu0 %v1402_v8  ;;  %v1499_v8 = vld [vmem:[#allocation7 + $0x30] sm:$0xff]  }
  0x80   :  { %900 = vmatpush1.bf16.msra.mxu1 %v1441_v19  ;;  %v179_v19 = vlaneseq }
  0x81   :  { %861 = vmatpush1.bf16.msra.mxu0 %v1400_v9  ;;  %901 = vmatprep.subr.bf16.mxu1 %v1449_v22  ;;  %v1500_v9 = vld [vmem:[#allocation7 + $0x78] sm:$0xff]   ;;  %v177_v22 = vld [vmem:[%s1703_s2] sm:$0x3] }
  0x82   :  { %862 = vmatprep.subr.bf16.mxu0 %v1408_v12  ;;  %v180_v20 = vshrl.u32 %v179_v19, 7 }
  0x84   :  { %902 = vmatpush1.bf16.msra.mxu1 %v1447_v25 }
  0x85   :  { %863 = vmatpush1.bf16.msra.mxu0 %v1406_v13  ;;  %903 = vmatprep.subr.bf16.mxu1 %v1455_v27 }
  0x86   :  { %864 = vmatprep.subr.bf16.mxu0 %v1414_v18 }
  0x88   :  { %904 = vmatpush1.bf16.msra.mxu1 %v1453_v29 }
  0x89   :  { %865 = vmatpush1.bf16.msra.mxu0 %v1412_v21  ;;  %905 = vmatprep.subr.bf16.mxu1 %v1461_v31  ;;  %v181_v21 = vsub.s32 0, %v180_v20 }
  0x8a   :  { %866 = vmatprep.subr.bf16.mxu0 %v1420_v23  ;;  %v185_v23 = vsub.s32 1, %v180_v20 }
  0x8b   :  { %v182_v24 = vrot.slane %v177_v22, %v181_v21 }
  0x8c   :  { %906 = vmatpush1.bf16.msra.mxu1 %v1459_v33  ;;  %v186_v25 = vrot.slane %v177_v22, %v185_v23 }
  0x8d   :  { %867 = vmatpush1.bf16.msra.mxu0 %v1418_v26  ;;  %907 = vmatprep.subr.bf16.mxu1 %v1467_v35 }
  0x8e   :  { %868 = vmatprep.subr.bf16.mxu0 %v1426_v28 }
  0x90   :  { %908 = vmatpush1.bf16.msra.mxu1 %v1465_v37 }
  0x91   :  { %869 = vmatpush1.bf16.msra.mxu0 %v1424_v30  ;;  %909 = vmatprep.subr.bf16.mxu1 %v1473_v39 }
  0x92   :  { %870 = vmatprep.subr.bf16.mxu0 %v1432_v32 }
  0x94   :  { %910 = vmatpush1.bf16.msra.mxu1 %v1471_v41  ;;  %v1253_v41 = vld [vmem:[%s1705_s4] ss:$0 sm:$0xff] }
  0x95   :  { %871 = vmatpush1.bf16.msra.mxu0 %v1430_v34  ;;  %911 = vmatprep.subr.bf16.mxu1 %v1479_v43 }
  0x96   :  { %872 = vmatprep.subr.bf16.mxu0 %v1440_v36 }
  0x98   :  { %912 = vmatpush1.bf16.msra.mxu1 %v1477_v45 }
  0x99   :  { %873 = vmatpush1.bf16.msra.mxu0 %v1438_v38  ;;  %1270 = vmatprep.subr.bf16.mxu1 %v1486_v59 }
  0x9a   :  { %874 = vmatprep.subr.bf16.mxu0 %v1446_v40 }
  0x9b   :  { %930 = vmatmul.mubr.bf16.vlgmr.msra.gmra.mrb[4].mxu1 %v1485_v48 }
  0x9c   :  { %1271 = vmatpush3.bf16.msra.mxu1 %v1487_v60 }
  0x9d   :  { %875 = vmatpush1.bf16.msra.mxu0 %v1444_v42  ;;  %1272 = vmatprep.subr.bf16.mxu1 %v1488_v61 }
  0x9e   :  { %876 = vmatprep.subr.bf16.mxu0 %v1452_v44 }
  0xa0   :  { %1273 = vmatpush3.bf16.msra.mxu1 %v1489_v62 }
  0xa1   :  { %877 = vmatpush1.bf16.msra.mxu0 %v1450_v46  ;;  %1274 = vmatprep.subr.bf16.mxu1 %v1490_v63 }
  0xa2   :  { %878 = vmatprep.subr.bf16.mxu0 %v1458_v47 }
  0xa4   :  { %1275 = vmatpush3.bf16.msra.mxu1 %v1491_v0 }
  0xa5   :  { %879 = vmatpush1.bf16.msra.mxu0 %v1456_v49  ;;  %1276 = vmatprep.subr.bf16.mxu1 %v1492_v1 }
  0xa6   :  { %880 = vmatprep.subr.bf16.mxu0 %v1464_v50 }
  0xa8   :  { %1277 = vmatpush3.bf16.msra.mxu1 %v1493_v2 }
  0xa9   :  { %881 = vmatpush1.bf16.msra.mxu0 %v1462_v51  ;;  %1278 = vmatprep.subr.bf16.mxu1 %v1494_v3 }
  0xaa   :  { %882 = vmatprep.subr.bf16.mxu0 %v1470_v52 }
  0xac   :  { %1279 = vmatpush3.bf16.msra.mxu1 %v1495_v4 }
  0xad   :  { %883 = vmatpush1.bf16.msra.mxu0 %v1468_v53  ;;  %1280 = vmatprep.subr.bf16.mxu1 %v1496_v5 }
  0xae   :  { %884 = vmatprep.subr.bf16.mxu0 %v1476_v54 }
  0xb0   :  { %1281 = vmatpush3.bf16.msra.mxu1 %v1497_v6 }
  0xb1   :  { %885 = vmatpush1.bf16.msra.mxu0 %v1474_v55  ;;  %1282 = vmatprep.subr.bf16.mxu1 %v1498_v7 }
  0xb2   :  { %886 = vmatprep.subr.bf16.mxu0 %v1482_v56 }
  0xb4   :  { %1283 = vmatpush3.bf16.msra.mxu1 %v1499_v8 }
  0xb5   :  { %887 = vmatpush1.bf16.msra.mxu0 %v1480_v57  ;;  %1284 = vmatprep.subr.bf16.mxu1 %v1500_v9 }
  0xb8   :  { %889 = vmatmul.mubr.bf16.vlgmr.msra.gmra.mrb[0].mxu0 %v1138_v58  ;;  %1285 = vmatpush3.bf16.msra.mxu1 %v1501_v10 }
 0x14e   :  { %v808_v11 = vpop.f32.mrb[0].mxu1 }
 0x14f   :  { %v810_v12 = vpop.f32.mrb[1].mxu1  ;;  %v809_v26 = vadd.f32 %v808_v11, %v182_v24 }
 0x150   :  { %v812_v13 = vpop.f32.mrb[2].mxu1  ;;  %v811_v27 = vadd.f32 %v810_v12, %v186_v25 }
 0x151   :  { %v813_v14 = vpop.f32.mrb[3].mxu1 }
 0x16e   :  { %v931_v15 = vpop.f32.mrb[4].mxu1 }
 0x16f   :  { %v933_v16 = vpop.f32.mrb[5].mxu1 }
 0x170   :  { %v935_v17 = vpop.f32.mrb[6].mxu1 }
 0x171   :  { %v936_v18 = vpop.f32.mrb[7].mxu1 }
 0x18b   :  { %v890_v28 = vpop.f32.mrb[0].mxu0 }
 0x18c   :  { %v1293_v29 = vadd.f32 %v890_v28, %v809_v26  ;;  %v892_v30 = vpop.f32.mrb[1].mxu0 }
 0x18d   :  { %v1296_v31 = vadd.f32 %v892_v30, %v811_v27  ;;  %v894_v32 = vpop.f32.mrb[2].mxu0 }
 0x18e   :  { %v1294_v33 = vadd.f32 %v1293_v29, %v931_v15  ;;  %v895_v34 = vpop.f32.mrb[3].mxu0 }
 0x18f   :  { %v1297_v35 = vadd.f32 %v1296_v31, %v933_v16 }
 0x190   :  { %v938_v36 = vmax.f32 %v1294_v33, 0.0 }
 0x191   :  { %v939_v37 = vmax.f32 %v1297_v35, 0.0 }
 0x192   :  { %v940_v39 = vpack.c.bf16 %v938_v36, %v938_v36 }
 0x193   :  { %v941_v38 = vpack.c.bf16 %v939_v37, %v939_v37 }
 0x195   :  { %1109 = vmatprep.mubr.bf16.mxu1 %v941_v38 }
 0x196   :  { %1110 = vmatmul.mubr.bf16.vlgmr.msra.gmra.mrb[8].mxu1 %v940_v39 }
 0x269   :  { %v1286_v40 = vpop.f32.mrb[8].mxu1 }
 0x26a   :  { %v1287_v42 = vpop.f32.mrb[9].mxu1 }
 0x26b   :  { %v1288_v43 = vadd.f32 %v1287_v42, %v1286_v40  ;;  %v1289_v44 = vpop.f32.mrb[10].mxu1 }
 0x26c   :  { %v1290_v45 = vpop.f32.mrb[11].mxu1 }
 0x26d   :  { %v1112_v46 = vadd.f32 %v1288_v43, %v1253_v41 }
 0x26f   :  { %1117 = vst [vmem:[#allocation8] sm:$0xff] %v1112_v46 }
 0x270   :  { %1579 = shalt.err (!%p1576_p0)
}
 0x271   :  { %s1580_s4 = scalar_lea.hbm %s1706_s5, 128 }
 0x272   :  { %p1581_p1 = scmp.ne.s32.totalorder %s1706_s5, %s1580_s4  ;;  %p1584_p2 = scmp.lt.u32.totalorder %s1580_s4, %s1706_s5 }
 0x274   :  { %p1586_p3 = pnand %p1584_p2, %p1581_p1 }
 0x276   :  { %1589 = shalt.err (!%p1586_p3)
}
 0x277   :  { %1127 = dma.vmem_to_hbm [thread:$0]  %s1125_s9, 128, %s1706_s5, [#allocation4]  }
 0x278   :  { %1594 = dma.done.wait [#allocation4], 128  }
 0x279   :  { %1595 = vsyncadd [#allocation4], 4294967168 }
 0x27a   :  { %1131 = vsyncpa [#allocation3], 1 }
 0x27b   :  { %1132 = vsyncpa [#allocation6], 1 }
 0x27c   :  { %1133 = vsyncpa [#allocation4], 1 }

</bundles_post_ra>
